<compile_context>
chip_gen: v7x
topology: tpu7x:2x2x1
jax: 0.10.0
libtpu: 0.0.40
codegen_flags: <defaults>
</compile_context>

<pallas_src>
import jax
import jax.numpy as jnp
from jax.experimental import pallas as pl
from jax.experimental.pallas import tpu as pltpu


def _outconv_kernel(w_ref, b_ref, x_ref, o_ref):
    # w_ref: (Cout, Cin), b_ref: (Cout, 1) float32
    # x_ref: (bn, Cin, tp), o_ref: (bn, Cout, tp) -- tp is the lane-dense pixel tile
    w = w_ref[...]
    bias = b_ref[...]                  # (Cout, 1): broadcasts over the pixel (lane) axis
    bn = x_ref.shape[0]

    def one_image(i):
        acc = jnp.dot(w, x_ref[i], preferred_element_type=jnp.float32)
        o_ref[i] = (acc + bias).astype(o_ref.dtype)

    if bn <= 8:
        # Short static loop: fully visible to the LLO scheduler.
        for i in range(bn):
            one_image(i)
    else:
        # Large batched blocks: rolled loop with dynamic first-axis indexing.
        def body(i, carry):
            one_image(i)
            return carry
        jax.lax.fori_loop(0, bn, body, 0)


def _vmem_limit_and_budget(resident_bytes):
    """Explicit VMEM limit + byte budget for the pipelined (double-buffered) blocks."""
    try:
        cap = int(pltpu.get_tpu_info().vmem_capacity_bytes)  # 64 MiB/TC (v7x), 128 MiB (v5e/v6e)
    except Exception:
        cap = 64 << 20                                       # conservative fallback (v7x per-core)
    limit = min((cap * 3) // 4, 96 << 20)                    # leave compiler headroom
    budget = limit - 2 * resident_bytes - (2 << 20)          # resident weights/bias + slack
    return int(limit), int(max(budget, 4 << 20))


def _choose_tiling(N, Cin, Cout, HW, x_itemsize, o_itemsize, budget_bytes):
    """Pick (bn, tp): images per grid step and lane-dense pixel tile size."""
    # Double-buffered input + output bytes per pixel column of one image.
    per_px = 2 * (Cin * x_itemsize + Cout * o_itemsize)
    max_px = max(budget_bytes // per_px, 128)

    if HW <= max_px:
        # Whole image(s) per step: the (bn, Cin, HW) block is fully contiguous in HBM.
        tp = HW
        bn = int(min(N, max(1, max_px // HW)))
        while bn > 1 and N % bn:          # keep batch blocks un-ragged
            bn -= 1
    else:
        bn = 1
        tp = max(128, (min(HW, max_px) // 128) * 128)
        if HW % 128 == 0:
            # Prefer a tile that divides HW: every store stays a full, unmasked
            # lane-dense vst and no DMA is clipped (only if it costs <= 2x tile size).
            t = tp
            while t > 128 and HW % t:
                t -= 128
            if HW % t == 0 and 2 * t >= tp:
                tp = t
        # If tp still does not divide HW, the final partial block is clipped by
        # Pallas on writeback (correct; garbage lanes never reach HBM).

    # Guarantee >= 2 grid steps so both TensorCores of a v7x chip get work.
    if pl.cdiv(N, bn) * pl.cdiv(HW, tp) < 2:
        if HW >= 256 and HW % 256 == 0:
            tp = HW // 2                  # two lane-dense, HW-dividing pixel tiles
        elif N >= 2:
            bn = max(d for d in range(1, N) if N % d == 0)
    return bn, tp


def out_conv(x, weight, bias, *, use_bf16=False, out_dtype=None):
    """1x1 conv (OutConv.forward).

    x: (N, C_in, H, W) NCHW; weight: (C_out, C_in, 1, 1); bias: (C_out,).
    Returns (N, C_out, H, W) in `out_dtype` (default: x.dtype).

    use_bf16: cast activations/weights to bf16 in the wrapper (f32 MXU
    accumulate, f32 bias add) to halve HBM bytes on this memory-bound kernel.
    """
    N, Cin, H, W = x.shape
    Cout = weight.shape[0]
    HW = H * W
    out_dtype = jnp.dtype(out_dtype if out_dtype is not None else x.dtype)

    # Pure reshapes only -- no NCHW<->NHWC transposes, no activation padding.
    xm = x.reshape(N, Cin, HW)                        # pixels on the last (lane) axis
    wm = weight.reshape(Cout, Cin)
    bm = bias.reshape(Cout, 1).astype(jnp.float32)    # bias add always in f32

    if use_bf16:
        xm = xm.astype(jnp.bfloat16)
        wm = wm.astype(jnp.bfloat16)

    x_isz = jnp.dtype(xm.dtype).itemsize
    w_isz = jnp.dtype(wm.dtype).itemsize
    o_isz = out_dtype.itemsize

    resident_bytes = Cout * Cin * w_isz + Cout * 4
    vmem_limit, budget = _vmem_limit_and_budget(resident_bytes)
    bn, tp = _choose_tiling(N, Cin, Cout, HW, x_isz, o_isz, budget)

    grid = (pl.cdiv(N, bn), pl.cdiv(HW, tp))

    cost = pl.CostEstimate(
        flops=2 * N * HW * Cin * Cout,
        transcendentals=0,
        bytes_accessed=(xm.size * x_isz + wm.size * w_isz
                        + bm.size * 4 + N * Cout * HW * o_isz),
    )

    out = pl.pallas_call(
        _outconv_kernel,
        out_shape=jax.ShapeDtypeStruct((N, Cout, HW), out_dtype),
        grid_spec=pltpu.PrefetchScalarGridSpec(
            num_scalar_prefetch=0,
            grid=grid,
            in_specs=[
                pl.BlockSpec((Cout, Cin), lambda b, p: (0, 0)),     # weight (resident)
                pl.BlockSpec((Cout, 1), lambda b, p: (0, 0)),       # bias   (resident)
                pl.BlockSpec((bn, Cin, tp), lambda b, p: (b, 0, p)),  # activations
            ],
            out_specs=pl.BlockSpec((bn, Cout, tp), lambda b, p: (b, 0, p)),
        ),
        compiler_params=pltpu.CompilerParams(
            dimension_semantics=("parallel", "parallel"),
            vmem_limit_bytes=vmem_limit,
        ),
        cost_estimate=cost,
    )(wm, bm, xm)

    # TODO(synk): if profiling still shows exposed DMA on v7x, add
    # pipeline_mode=pl.Buffered(3) to the activation/output BlockSpecs.
    return out.reshape(N, Cout, H, W)


if __name__ == "__main__":
    key = jax.random.PRNGKey(0)
    k_x, k_w, k_b = jax.random.split(key, 3)

    N, Cin, Cout, H, W = 2, 4, 3, 16, 16

    x = jax.random.normal(k_x, (N, Cin, H, W), dtype=jnp.float32)
    # Deterministic init mimicking nn.Conv2d default (uniform in +-1/sqrt(fan_in))
    bound = 1.0 / jnp.sqrt(jnp.float32(Cin * 1 * 1))
    weight = jax.random.uniform(k_w, (Cout, Cin, 1, 1), jnp.float32, -bound, bound)
    bias = jax.random.uniform(k_b, (Cout,), jnp.float32, -bound, bound)

    # Reference in plain JAX (einsum over channels).
    y_ref = jnp.einsum("nchw,oc->nohw", x, weight.reshape(Cout, Cin)) \
        + bias.reshape(1, Cout, 1, 1)

    # f32 path (exact numerics).
    y = out_conv(x, weight, bias)
    jax.block_until_ready(y)
    assert y.shape == (N, Cout, H, W)
    assert jnp.allclose(y, y_ref, atol=1e-5, rtol=1e-5)

    # bf16 activation/weight path (f32 accumulate + f32 output): looser check.
    y_bf16 = out_conv(x, weight, bias, use_bf16=True)
    jax.block_until_ready(y_bf16)
    assert y_bf16.shape == (N, Cout, H, W)
    assert jnp.allclose(y_bf16, y_ref, atol=3e-2, rtol=3e-2)

    print("KERNEL_OK")
</pallas_src>

<mosaic_0001>
module attributes {stable_mosaic.version = 11 : i64} {
  func.func @_outconv_kernel(%arg0: i32, %arg1: i32, %arg2: memref<3x4xf32, #tpu.memory_space<vmem>>, %arg3: memref<3x1xf32, #tpu.memory_space<vmem>>, %arg4: memref<2x4x128xf32, #tpu.memory_space<vmem>>, %arg5: memref<2x3x128xf32, #tpu.memory_space<vmem>>) attributes {dimension_semantics = [#tpu.dimension_semantics<parallel>, #tpu.dimension_semantics<parallel>], iteration_bounds = array<i64: 1, 2>, scalar_prefetch = 0 : i64, scratch_operands = 0 : i64, tpu.core_type = #tpu.core_type<tc>, window_params = [{pipeline_mode = #tpu.pipeline_mode<synchronous>, transform_indices = @transform_0, window_bounds = array<i64: 3, 4>}, {pipeline_mode = #tpu.pipeline_mode<synchronous>, transform_indices = @transform_1, window_bounds = array<i64: 3, 1>}, {transform_indices = @transform_2, window_bounds = array<i64: 2, 4, 128>}, {transform_indices = @transform_3, window_bounds = array<i64: 2, 3, 128>}]} {
    %c0 = arith.constant 0 : index
    %c0_0 = arith.constant 0 : index
    %0 = vector.load %arg2[%c0, %c0_0] : memref<3x4xf32, #tpu.memory_space<vmem>>, vector<3x4xf32>
    %c0_1 = arith.constant 0 : index
    %c0_2 = arith.constant 0 : index
    %1 = vector.load %arg3[%c0_1, %c0_2] : memref<3x1xf32, #tpu.memory_space<vmem>>, vector<3x1xf32>
    %c0_3 = arith.constant 0 : index
    %c0_4 = arith.constant 0 : index
    %c0_5 = arith.constant 0 : index
    %2 = vector.load %arg4[%c0_3, %c0_4, %c0_5] : memref<2x4x128xf32, #tpu.memory_space<vmem>>, vector<1x4x128xf32>
    %3 = vector.shape_cast %2 : vector<1x4x128xf32> to vector<4x128xf32>
    %cst = arith.constant dense<0.000000e+00> : vector<3x128xf32>
    %4 = tpu.matmul %0, %3, %cst {dimension_numbers = #tpu.dot_dimension_numbers<[1], [0], [0], [1], [0, 0, 1, 1], [], []>} : vector<3x4xf32>, vector<4x128xf32>, vector<3x128xf32> -> vector<3x128xf32>
    %5 = vector.broadcast %1 : vector<3x1xf32> to vector<3x128xf32>
    %6 = arith.addf %4, %5 : vector<3x128xf32>
    %c0_6 = arith.constant 0 : index
    %c0_7 = arith.constant 0 : index
    %c0_8 = arith.constant 0 : index
    %7 = vector.load %arg5[%c0_6, %c0_7, %c0_8] : memref<2x3x128xf32, #tpu.memory_space<vmem>>, vector<1x3x128xf32>
    %8 = vector.shape_cast %7 : vector<1x3x128xf32> to vector<3x128xf32>
    %9 = vector.shape_cast %6 : vector<3x128xf32> to vector<1x3x128xf32>
    tpu.vector_store %arg5[%c0_6, %c0_7, %c0_8], %9 {strides = array<i32>} : memref<2x3x128xf32, #tpu.memory_space<vmem>>, vector<1x3x128xf32>,
    %c1 = arith.constant 1 : index
    %c0_9 = arith.constant 0 : index
    %c0_10 = arith.constant 0 : index
    %10 = vector.load %arg4[%c1, %c0_9, %c0_10] : memref<2x4x128xf32, #tpu.memory_space<vmem>>, vector<1x4x128xf32>
    %11 = vector.shape_cast %10 : vector<1x4x128xf32> to vector<4x128xf32>
    %cst_11 = arith.constant dense<0.000000e+00> : vector<3x128xf32>
    %12 = tpu.matmul %0, %11, %cst_11 {dimension_numbers = #tpu.dot_dimension_numbers<[1], [0], [0], [1], [0, 0, 1, 1], [], []>} : vector<3x4xf32>, vector<4x128xf32>, vector<3x128xf32> -> vector<3x128xf32>
    %13 = vector.broadcast %1 : vector<3x1xf32> to vector<3x128xf32>
    %14 = arith.addf %12, %13 : vector<3x128xf32>
    %c1_12 = arith.constant 1 : index
    %c0_13 = arith.constant 0 : index
    %c0_14 = arith.constant 0 : index
    %15 = vector.load %arg5[%c1_12, %c0_13, %c0_14] : memref<2x3x128xf32, #tpu.memory_space<vmem>>, vector<1x3x128xf32>
    %16 = vector.shape_cast %15 : vector<1x3x128xf32> to vector<3x128xf32>
    %17 = vector.shape_cast %14 : vector<3x128xf32> to vector<1x3x128xf32>
    tpu.vector_store %arg5[%c1_12, %c0_13, %c0_14], %17 {strides = array<i32>} : memref<2x3x128xf32, #tpu.memory_space<vmem>>, vector<1x3x128xf32>,
    return
  }
  func.func @transform_0(%arg0: i32, %arg1: i32) -> (i32, i32) {
    %c0_i32 = arith.constant 0 : i32
    %c0_i32_0 = arith.constant 0 : i32
    %c0_i32_1 = arith.constant 0 : i32
    return %c0_i32, %c0_i32_0 : i32, i32
  }
  func.func @transform_1(%arg0: i32, %arg1: i32) -> (i32, i32) {
    %c0_i32 = arith.constant 0 : i32
    %c0_i32_0 = arith.constant 0 : i32
    %c0_i32_1 = arith.constant 0 : i32
    return %c0_i32, %c0_i32_0 : i32, i32
  }
  func.func @transform_2(%arg0: i32, %arg1: i32) -> (i32, i32, i32) {
    %c0_i32 = arith.constant 0 : i32
    %c0_i32_0 = arith.constant 0 : i32
    return %arg0, %c0_i32, %arg1 : i32, i32, i32
  }
  func.func @transform_3(%arg0: i32, %arg1: i32) -> (i32, i32, i32) {
    %c0_i32 = arith.constant 0 : i32
    %c0_i32_0 = arith.constant 0 : i32
    return %arg0, %c0_i32, %arg1 : i32, i32, i32
  }
}

</mosaic_0001>

<bundles_post_ra>
// kernel: tpu_custom_call.1
= control target key start
LH: loop header
LB: loop body
LE: loop exit
PB: predicated region body
PF: predicated region fallthrough
CT: control target
= control target key end

     0   :  { %8 = vsyncpa [#allocation3], 0  ;;  %s843_s0 = inlined_call_operand.vmem [shape: f32[3,4], index: 0, kind: input, shape index: {}]   ;;  %s844_s1 = inlined_call_operand.vmem [shape: f32[3,1], index: 1, kind: input, shape index: {}]   ;;  %s845_s2 = inlined_call_operand.hbm [shape: f32[2,4,256], index: 2, kind: input, shape index: {}]   ;;  %s846_s3 = inlined_call_operand.vmem [shape: f32[2,3,256], index: 3, kind: output, shape index: {}]  }
   0x1   :  { %10 = vsyncpa [#allocation3 + $0x1], 0  ;;  %s702_s12 = smov 0   ;;  %s704_s13 = smov 0  }
   0x2   :  { %s706_s14 = smov 0   ;;  %s708_s15 = smov 0  }
   0x3   :  { %s710_s16 = smov 0   ;;  %s712_s17 = smov 0  }
   0x4 LB: > { %s498_s18 = sadd.s32 4294967295, %s673_s17   ;;  %s25_s19 = sadd.s32 1, %s669_s16  ;;  %s673_s17 = sphi %s712_s17, %s16_s17   ;;  %s669_s16 = sphi %s710_s16, %s857_s16   ;;  %s665_s15 = sphi %s708_s15, %s856_s15   ;;  %s661_s14 = sphi %s706_s14, %s855_s14   ;;  %s657_s13 = sphi %s704_s13, %s854_s13   ;;  %s653_s12 = sphi %s702_s12, %s853_s12  }
   0x5   : > { %p26_p0 = scmp.ge.s32.totalorder %s25_s19, 2  ;;  %s79_s20 = sadd.s32 1, %s661_s14 }
   0x6   : > { %p86_p1 = scmp.ne.s32.totalorder %s661_s14, %s657_s13  ;;  %p87_p2 = scmp.eq.s32.totalorder %s673_s17, 0 }
   0x7   : > { %s859_s19 = smov (%p26_p0, %s25_s19), 0  ;;  %p92_p4 = scmp.ne.s32.totalorder %s657_s13, %s653_s12 }
   0x8   : > { %p738_p3 = por %p87_p2, %p86_p1  ;;  %s75_s22 = ssub.s32 %s669_s16, %s859_s19 }
   0x9   : > { %p93_p5 = scmp.eq.s32.totalorder %s498_s18, 0  ;;  %p77_p6 = scmp.eq.s32.totalorder %s75_s22, 0 }
   0xa   : > { %p118_p7 = scmp.eq.s32.totalorder %s498_s18, 1  ;;  %p537_p10 = scmp.lt.s32.totalorder %s673_s17, 2 }
   0xb   : > { %p745_p8 = por %p93_p5, %p92_p4  ;;  %s150_s26 = sand.u32 1, %s661_s14  }
   0xc   : > { %s750_s24 = scalar_select %p77_p6, %s661_s14, %s79_s20  }
   0xd   : > { %p752_p9 = por %p118_p7, %p86_p1  ;;  %s503_s27 = sshll.u32 %s669_s16, 6 }
   0xe   : > { %s502_s28 = sshll.u32 %s150_s26, 3  ;;  %s762_s4 = scalar_lea.hbm %s845_s2, %s503_s27 }
   0xf   : > { %s849_s25 = scalar_select %p752_p9, 1, 0 }
  0x10   : > { %s154_s5 = scalar_lea.vmem [#allocation2], %s502_s28  ;;  %p766_p11 = pnand %p537_p10, %p738_p3 }
  0x11   : > { %s163_s6 = sshll.u32 %s154_s5, 4  ;;  %s773_s8 = scalar_lea.sflag [#allocation3], %s150_s26  ;;  %s770_s6 = int_to_ptr.vmem [resolvable:$true] %s163_s6 }
  0x12   : > { %s593_s9 = scalar_lea.hbm %s762_s4, 128  ;;  %p595_p0 = pneg %p766_p11 }
  0x13   : > { %p594_p13 = scmp.ne.s32.totalorder %s762_s4, %s593_s9  ;;  %s598_s12 = scalar_lea.hbm %s845_s2, 256 }
  0x14   : > { %p599_p3 = scmp.lt.u32.totalorder %s762_s4, %s845_s2  ;;  %p600_p4 = scmp.lt.u32.totalorder %s598_s12, %s593_s9 }
  0x15   : > { %p596_p1 = pnand %p595_p0, %p594_p13  ;;  %p602_p6 = scmp.lt.u32.totalorder %s593_s9, %s762_s4 }
  0x16   : > { %p601_p5 = por %p600_p4, %p599_p3 }
  0x17   : > { %p597_p2 = pneg %p596_p1 }
  0x18   : > { %p603_p7 = por %p602_p6, %p601_p5 }
  0x1a   : > { %p604_p10 = pnand %p603_p7, %p597_p2 }
  0x1c   : > { %607 = shalt.err (!%p604_p10)
}
  0x1d   : > { %s608_s21 = scalar_lea.vmem %s770_s6, 128  ;;  %s675_s22 = smov [#allocation2]  }
  0x1e   : > { %p609_p13 = scmp.ne.s32.totalorder %s770_s6, %s608_s21  ;;  %s613_s26 = sshll.u32 %s675_s22, 4  ;;  %s614_s26 = int_to_ptr.vmem [resolvable:$false] %s613_s26 }
  0x1f   : > { %s615_s27 = scalar_lea.vmem %s614_s26, 256  ;;  %p616_p9 = scmp.lt.s32.totalorder %s770_s6, %s614_s26 }
  0x20   : > { %p611_p1 = pnand %p609_p13, %p595_p0  ;;  %p617_p3 = scmp.lt.s32.totalorder %s615_s27, %s608_s21 }
  0x22   : > { %p612_p12 = pneg %p611_p1  ;;  %p618_p4 = por %p617_p3, %p616_p9 }
  0x24   : > { %p619_p5 = pnand %p618_p4, %p612_p12 }
  0x26   : > { %622 = shalt.err (!%p619_p5)
}
  0x27   : > { %s676_s28 = smov 128   ;;  %s677_s29 = smov 64  }
  0x28   : > { %s678_s30 = smov 4   ;;  %p171_p0 = scmp.lt.s32.totalorder %s673_s17, 3 }
  0x29   : > { %536 = dma.hbm_to_vmem [thread:$0]  (!%p766_p11), %s762_s4, 128, %s770_s6, %s773_s8, %s676_s28, %s677_s29, %s678_s30  }
  0x2a   : > { %p851_p2 = scmp.ge.s32.totalorder %s673_s17, 1 }
  0x2c   : > { %p172_p6 = pnand %p851_p2, %p171_p0 }
  0x2d   : > { %s177_s5 = sand.u32 (!%p172_p6), 1, %s657_s13  }
  0x2e   : > { %175 = sbr.rel (%p172_p6) target bundleno = 282 (0x11a), region = 32  ;;  %s805_s9 = sshll.u32 (!%p172_p6), %s177_s5, 3 }
  0x2f   : > { %s178_s10 = scalar_lea.sflag (!%p172_p6), [#allocation3], %s177_s5  ;;  %s181_s11 = scalar_lea.vmem (!%p172_p6), [#allocation2], %s805_s9 }
  0x35   : > { %648 = dma.done.wait (%p745_p8), %s178_s10, 128  }
  0x36   : > { %650 = vsyncadd (%p745_p8), %s178_s10, 4294967168  ;;  %v679_v0 = vmov 0.0   ;;  %vm680_vm0 = vmmov 0   ;;  %v681_v1 = vmov 0   ;;  %vm217_vm1 = vcmask 1043456   ;;  %s202_s8 = scalar_lea.vmem [#allocation4], %s805_s9 }
  0x37   : > { %521 = vmatprep.subr.mxu0 %v679_v0  ;;  %526 = vmatprep.subr.mxu1 %v679_v0  ;;  %vm213_vm2 = vcmask 31744   ;;  %v207_v2 = vld [vmem:[%s181_s11] sm:$0xf]  ;;  %v509_v3 = vld [vmem:[%s181_s11 + $0x4] sm:$0xf]  ;;  %p852_p8 = scmp.ne.s32.totalorder %s849_s25, 0 }
  0x38   : > { %523 = vmatprep.mubr.msk.f32.mxu0 %vm680_vm0, %v679_v0  ;;  %528 = vmatprep.mubr.msk.f32.mxu1 %vm680_vm0, %v679_v0  ;;  %v205_v4 = vld [vmem:[%s843_s0] sm:$0x7]  ;;  %s514_s12 = sshll.u32 (%p852_p8), %s665_s15, 2 }
  0x39   : > { %592 = vset.pattern.permute.xlu0 %v681_v1  ;;  %522 = vmatpush3.msk.msra.mxu0 %vm217_vm1, %v207_v2  ;;  %v206_v5 = vld [vmem:[%s844_s1] sm:$0x7]  ;;  %s380_s21 = scalar_lea.vmem (%p852_p8), %s846_s3, %s514_s12 }
  0x3a   : > { %527 = vmatpush3.msk.msra.mxu1 %vm217_vm1, %v509_v3  ;;  %524 = vmatmul.mubr.msk.f32.vlgmr.msra.gmra.mrb[0].mxu0 %vm213_vm2, %v205_v4 }
  0x3b   : > { %529 = vmatmul.mubr.msk.f32.vlgmr.msra.gmra.mrb[0].mxu1 %vm213_vm2, %v205_v4  ;;  %210 = vperm.xlu0 %592, %v206_v5  }
  0xba   : > { %v211_v6 = vpop.permute.xlu0 %210 }
 0x10b   : > { %375 = sbr.rel (!%p852_p8) target bundleno = 282 (0x11a), region = 40 }
 0x10d   : > { %v287_v7 = vpop.f32.mrb[0].mxu0 }
 0x10e   : > { %v363_v8 = vpop.f32.mrb[0].mxu1  ;;  %v288_v9 = vadd.f32 %v287_v7, %v211_v6  ;;  %v525_v11 = vpop.f32.mrb[1].mxu0 }
 0x10f   : > { %v364_v10 = vadd.f32 %v363_v8, %v211_v6  ;;  %v530_v12 = vpop.f32.mrb[1].mxu1 }
 0x110   : > { %291 = vst [vmem:[%s202_s8] sm:$0x7] %v288_v9 }
 0x111   : > { %512 = vst [vmem:[%s202_s8 + $0x4] sm:$0x7] %v364_v10 }
 0x117   : > { %v396_v13 = vld [vmem:[%s202_s8] sm:$0xf] }
 0x118   : > { %v398_v14 = vld [vmem:[%s202_s8 + $0x4] sm:$0xf]  ;;  %397 = vst [vmem:[%s380_s21] sm:$0xf] %v396_v13 }
 0x119   : > { %399 = vst [vmem:[%s380_s21 + $0x8] sm:$0xf] %v398_v14 }
 0x11a PF: > { %s16_s17 = sadd.s32 1, %s673_s17   ;;  %s853_s12 = smov %s657_s13 }
 0x11b   : > { %p13_p9 = scmp.ge.s32.totalorder %s16_s17, 4   ;;  %s854_s13 = smov %s661_s14 }
 0x11c   : > { %s855_s14 = smov %s750_s24  ;;  %s856_s15 = smov %s669_s16 }
 0x11d   : > { %s857_s16 = smov %s859_s19  ;;  %15 = sbr.rel (!%p13_p9) target bundleno = 4 (0x4), region = 115 }
 0x124   :  { %436 = vsyncpa [#allocation3], 1 }
 0x125   :  { %438 = vsyncpa [#allocation3 + $0x1], 1 }

</bundles_post_ra>
